<compile_context>
chip_gen: v7x
topology: tpu7x:2x2x1
jax: 0.10.0
libtpu: 0.0.40
codegen_flags: <defaults>
</compile_context>

<pallas_src>
import jax
import jax.numpy as jnp
from jax.experimental import pallas as pl
from jax.experimental.pallas import tpu as pltpu


def _round_up(x: int, m: int) -> int:
    return ((x + m - 1) // m) * m


# --------------------------------------------------------------------------
# Fused matmul kernel:  O = [sigmoid](W @ X + b) [+ A]   (lane dim = pixels)
# --------------------------------------------------------------------------
def _make_matmul_kernel(has_bias: bool, apply_sigmoid: bool, has_add: bool):
    def kernel(*refs):
        idx = 0
        w_ref = refs[idx]; idx += 1
        x_ref = refs[idx]; idx += 1
        b_ref = None
        a_ref = None
        if has_bias:
            b_ref = refs[idx]; idx += 1
        if has_add:
            a_ref = refs[idx]; idx += 1
        o_ref = refs[idx]

        # MXU matmul, always accumulating in f32.
        y = jnp.dot(w_ref[...], x_ref[...], preferred_element_type=jnp.float32)
        if has_bias:
            y = y + b_ref[...]                 # (M,1) broadcast across lanes
        if apply_sigmoid:
            y = jax.nn.sigmoid(y)
        if has_add:
            y = y + a_ref[...]                 # fused FCN skip-add
        o_ref[...] = y.astype(o_ref.dtype)

    return kernel


def matmul_cr(w, x, bias=None, add=None, sigmoid=False, tile_r=512):
    """O = [sigmoid](w @ x + bias) [+ add]; x/out in channel-major (C, R) layout."""
    M, K = w.shape
    K2, R = x.shape
    assert K == K2, (w.shape, x.shape)

    tr = min(tile_r, _round_up(R, 128))        # lane tile, multiple of 128
    Rp = _round_up(R, tr)

    # bf16 MXU operands only when the contraction is substantial; tiny-K
    # polyphase convT matmuls stay f32 (they are memory-bound on f32 output).
    in_dtype = jnp.bfloat16 if K >= 128 else jnp.float32
    itemsize = jnp.dtype(in_dtype).itemsize

    xp = jnp.pad(x.astype(jnp.float32), ((0, 0), (0, Rp - R))).astype(in_dtype)
    wb = w.astype(in_dtype)

    has_bias = bias is not None
    has_add = add is not None

    args = [wb, xp]
    in_specs = [
        pl.BlockSpec((M, K), lambda r: (0, 0)),      # whole weight, resident
        pl.BlockSpec((K, tr), lambda r: (0, r)),     # activation lane tile
    ]
    if has_bias:
        args.append(bias.reshape(M, 1).astype(jnp.float32))
        in_specs.append(pl.BlockSpec((M, 1), lambda r: (0, 0)))
    if has_add:
        ap = jnp.pad(add.astype(jnp.float32), ((0, 0), (0, Rp - R)))
        args.append(ap)
        in_specs.append(pl.BlockSpec((M, tr), lambda r: (0, r)))

    cost = pl.CostEstimate(
        flops=2 * M * K * Rp + M * Rp * (int(has_bias) + int(has_add)),
        transcendentals=M * Rp if sigmoid else 0,
        bytes_accessed=(M * K + K * Rp) * itemsize
                       + M * Rp * 4 * (1 + int(has_add))
                       + (M * 4 if has_bias else 0),
    )

    out = pl.pallas_call(
        _make_matmul_kernel(has_bias, sigmoid, has_add),
        out_shape=jax.ShapeDtypeStruct((M, Rp), jnp.float32),
        grid=(Rp // tr,),
        in_specs=in_specs,
        out_specs=pl.BlockSpec((M, tr), lambda r: (0, r)),
        compiler_params=pltpu.CompilerParams(
            dimension_semantics=("parallel",)),
        cost_estimate=cost,
    )(*args)
    return out[:, :R]


# --------------------------------------------------------------------------
# Layout glue (pure data movement, fused away by XLA under jit)
# --------------------------------------------------------------------------
def to_cr(x_nchw):
    N, C, H, W = x_nchw.shape
    return jnp.transpose(x_nchw, (1, 0, 2, 3)).reshape(C, N * H * W)


def from_cr(x_cr, N, H, W):
    C = x_cr.shape[0]
    return jnp.transpose(x_cr.reshape(C, N, H, W), (1, 0, 2, 3))


# --------------------------------------------------------------------------
# Ops
# --------------------------------------------------------------------------
def pointwise_conv(x_nchw, w, b, add_nchw=None, sigmoid=False):
    """1x1 conv (+bias, optional sigmoid, optional fused residual). NCHW->NCHW."""
    N, _, H, W = x_nchw.shape
    add = None if add_nchw is None else to_cr(add_nchw)
    o = matmul_cr(w, to_cr(x_nchw), bias=b, add=add, sigmoid=sigmoid)
    return from_cr(o, N, H, W)


def conv_transpose(x_nchw, w, stride):
    """ConvTranspose2d(Cin, Cout, k=2*stride, stride, bias=False).

    w is the PyTorch weight layout (Cin, Cout, k, k). Polyphase decomposition:
    out[n,co,qy*s+py,qx*s+px] = sum_{ci,u,v in {0,1}}
        xpad[n,ci,qy+u,qx+v] * w[ci,co,(1-u)*s+py,(1-v)*s+px]
    so the whole layer is one (Cout*s*s, Cin*4) x (Cin*4, N*Hq*Wq) matmul.
    """
    N, Cin, Hi, Wi = x_nchw.shape
    Cout, k = w.shape[1], w.shape[2]
    s = stride
    assert k == 2 * s, "polyphase path assumes kernel_size == 2*stride (FCN8 decoder)"
    # TODO(synk): general k != 2*stride ConvTranspose2d is not needed by this module.
    Hq, Wq = Hi + 1, Wi + 1                      # Ho = (Hi-1)*s + k = Hq*s

    # 2x2 im2col of the 1-padded input (only nonzero taps per output phase).
    xpad = jnp.pad(x_nchw, ((0, 0), (0, 0), (1, 1), (1, 1)))
    slabs = [xpad[:, :, u:u + Hq, v:v + Wq] for u in (0, 1) for v in (0, 1)]
    xcol = jnp.stack(slabs, axis=2)                                   # (N,Cin,4,Hq,Wq)
    xcol = jnp.transpose(xcol, (1, 2, 0, 3, 4)).reshape(Cin * 4, N * Hq * Wq)

    # Phase weights: Wph[(co,py,px),(ci,u,v)] = w[ci,co,(1-u)*s+py,(1-v)*s+px]
    wr = w.reshape(Cin, Cout, 2, s, 2, s)
    wph = jnp.flip(wr, axis=(2, 4))
    wph = jnp.transpose(wph, (1, 3, 5, 0, 2, 4)).reshape(Cout * s * s, Cin * 4)

    y = matmul_cr(wph, xcol)                                          # (Cout*s*s, N*Hq*Wq)

    y = y.reshape(Cout, s, s, N, Hq, Wq)
    return jnp.transpose(y, (3, 0, 4, 1, 5, 2)).reshape(N, Cout, Hq * s, Wq * s)


# --------------------------------------------------------------------------
# Decoder forward (mirrors the PyTorch module)
# --------------------------------------------------------------------------
def decoder_forward(params, pool3, pool4, pool5, x_size):
    # o = sigmoid(classifier(pool5))
    o = pointwise_conv(pool5, params["cls_w"], params["cls_b"], sigmoid=True)
    # o = upsampling2(o); o = o[:, :, 1:1+H4, 1:1+W4] + score_pool4(pool4)
    o = conv_transpose(o, params["up2_w"], stride=2)
    H4, W4 = pool4.shape[2], pool4.shape[3]
    o = pointwise_conv(pool4, params["sp4_w"], params["sp4_b"],
                       add_nchw=o[:, :, 1:1 + H4, 1:1 + W4])
    # o = upsampling2(o); o = o[:, :, 1:1+H3, 1:1+W3] + score_pool3(pool3)
    o = conv_transpose(o, params["up2_w"], stride=2)
    H3, W3 = pool3.shape[2], pool3.shape[3]
    o = pointwise_conv(pool3, params["sp3_w"], params["sp3_b"],
                       add_nchw=o[:, :, 1:1 + H3, 1:1 + W3])
    # o = upsampling8(o); center crop to the original spatial size
    o = conv_transpose(o, params["up8_w"], stride=8)
    cy = (o.shape[2] - x_size[2]) // 2
    cx = (o.shape[3] - x_size[3]) // 2
    return o[:, :, cy:cy + x_size[2], cx:cx + x_size[3]]


def init_params(key, n_classes):
    k1, k2, k3, k4, k5 = jax.random.split(key, 5)
    std1 = (2.0 / (n_classes * 1 * 1)) ** 0.5   # kaiming_normal, mode='fan_out', 1x1
    return dict(
        # 1x1 conv weights stored as (out_channels, in_channels)
        cls_w=jax.random.normal(k1, (n_classes, 512), jnp.float32) * std1,
        cls_b=jnp.zeros((n_classes,), jnp.float32),
        sp4_w=jax.random.normal(k2, (n_classes, 512), jnp.float32) * std1,
        sp4_b=jnp.zeros((n_classes,), jnp.float32),
        sp3_w=jax.random.normal(k3, (n_classes, 256), jnp.float32) * std1,
        sp3_b=jnp.zeros((n_classes,), jnp.float32),
        # ConvTranspose2d weights keep PyTorch layout (Cin, Cout, k, k)
        up2_w=jax.random.normal(k4, (n_classes, n_classes, 4, 4), jnp.float32) * 0.1,
        up8_w=jax.random.normal(k5, (n_classes, n_classes, 16, 16), jnp.float32) * 0.05,
    )


if __name__ == "__main__":
    key = jax.random.PRNGKey(0)
    n_classes = 2
    N, H, W = 2, 32, 32
    x_size = (N, 3, H, W)          # original input size (NCHW), as in the module

    ks = jax.random.split(key, 4)
    pool3 = jax.random.normal(ks[0], (N, 256, H // 8, W // 8), jnp.float32)
    pool4 = jax.random.normal(ks[1], (N, 512, H // 16, W // 16), jnp.float32)
    pool5 = jax.random.normal(ks[2], (N, 512, H // 32, W // 32), jnp.float32)
    params = init_params(ks[3], n_classes)

    fwd = jax.jit(decoder_forward, static_argnames=("x_size",))
    out = jax.block_until_ready(fwd(params, pool3, pool4, pool5, x_size=x_size))

    assert out.shape == (N, n_classes, H, W), out.shape
    assert bool(jnp.all(jnp.isfinite(out)))
    print("KERNEL_OK")
</pallas_src>

<mosaic_0001>
module attributes {stable_mosaic.version = 11 : i64} {
  func.func @kernel(%arg0: i32, %arg1: memref<2x512xbf16, #tpu.memory_space<vmem>>, %arg2: memref<512x128xbf16, #tpu.memory_space<vmem>>, %arg3: memref<2x1xf32, #tpu.memory_space<vmem>>, %arg4: memref<2x128xf32, #tpu.memory_space<vmem>>) attributes {dimension_semantics = [#tpu.dimension_semantics<parallel>], iteration_bounds = array<i64: 1>, scalar_prefetch = 0 : i64, scratch_operands = 0 : i64, tpu.core_type = #tpu.core_type<tc>, window_params = [{pipeline_mode = #tpu.pipeline_mode<synchronous>, transform_indices = @transform_0, window_bounds = array<i64: 2, 512>}, {transform_indices = @transform_1, window_bounds = array<i64: 512, 128>}, {pipeline_mode = #tpu.pipeline_mode<synchronous>, transform_indices = @transform_2, window_bounds = array<i64: 2, 1>}, {transform_indices = @transform_3, window_bounds = array<i64: 2, 128>}]} {
    %c0 = arith.constant 0 : index
    %c0_0 = arith.constant 0 : index
    %0 = vector.load %arg1[%c0, %c0_0] : memref<2x512xbf16, #tpu.memory_space<vmem>>, vector<2x512xbf16>
    %c0_1 = arith.constant 0 : index
    %c0_2 = arith.constant 0 : index
    %1 = vector.load %arg2[%c0_1, %c0_2] : memref<512x128xbf16, #tpu.memory_space<vmem>>, vector<512x128xbf16>
    %cst = arith.constant dense<0.000000e+00> : vector<2x128xf32>
    %2 = tpu.matmul %0, %1, %cst {dimension_numbers = #tpu.dot_dimension_numbers<[1], [0], [0], [1], [0, 0, 1, 1], [], []>} : vector<2x512xbf16>, vector<512x128xbf16>, vector<2x128xf32> -> vector<2x128xf32>
    %c0_3 = arith.constant 0 : index
    %c0_4 = arith.constant 0 : index
    %3 = vector.load %arg3[%c0_3, %c0_4] : memref<2x1xf32, #tpu.memory_space<vmem>>, vector<2x1xf32>
    %4 = vector.broadcast %3 : vector<2x1xf32> to vector<2x128xf32>
    %5 = arith.addf %2, %4 : vector<2x128xf32>
    %6 = arith.negf %5 : vector<2x128xf32>
    %7 = math.exp %6 : vector<2x128xf32>
    %cst_5 = arith.constant 1.000000e+00 : f32
    %8 = vector.broadcast %cst_5 : f32 to vector<2x128xf32>
    %9 = arith.addf %8, %7 : vector<2x128xf32>
    %10 = arith.divf %8, %9 : vector<2x128xf32>
    %c0_6 = arith.constant 0 : index
    %c0_7 = arith.constant 0 : index
    %11 = vector.load %arg4[%c0_6, %c0_7] : memref<2x128xf32, #tpu.memory_space<vmem>>, vector<2x128xf32>
    tpu.vector_store %arg4[%c0_6, %c0_7], %10 {strides = array<i32>} : memref<2x128xf32, #tpu.memory_space<vmem>>, vector<2x128xf32>,
    return
  }
  func.func @transform_0(%arg0: i32) -> (i32, i32) {
    %c0_i32 = arith.constant 0 : i32
    %c0_i32_0 = arith.constant 0 : i32
    %c0_i32_1 = arith.constant 0 : i32
    return %c0_i32, %c0_i32_0 : i32, i32
  }
  func.func @transform_1(%arg0: i32) -> (i32, i32) {
    %c0_i32 = arith.constant 0 : i32
    %c0_i32_0 = arith.constant 0 : i32
    return %c0_i32, %arg0 : i32, i32
  }
  func.func @transform_2(%arg0: i32) -> (i32, i32) {
    %c0_i32 = arith.constant 0 : i32
    %c0_i32_0 = arith.constant 0 : i32
    %c0_i32_1 = arith.constant 0 : i32
    return %c0_i32, %c0_i32_0 : i32, i32
  }
  func.func @transform_3(%arg0: i32) -> (i32, i32) {
    %c0_i32 = arith.constant 0 : i32
    %c0_i32_0 = arith.constant 0 : i32
    return %c0_i32, %arg0 : i32, i32
  }
}

module attributes {stable_mosaic.version = 11 : i64} {
  func.func @kernel(%arg0: i32, %arg1: memref<8x8xf32, #tpu.memory_space<vmem>>, %arg2: memref<8x128xf32, #tpu.memory_space<vmem>>, %arg3: memref<8x128xf32, #tpu.memory_space<vmem>>) attributes {dimension_semantics = [#tpu.dimension_semantics<parallel>], iteration_bounds = array<i64: 1>, scalar_prefetch = 0 : i64, scratch_operands = 0 : i64, tpu.core_type = #tpu.core_type<tc>, window_params = [{pipeline_mode = #tpu.pipeline_mode<synchronous>, transform_indices = @transform_0, window_bounds = array<i64: 8, 8>}, {transform_indices = @transform_1, window_bounds = array<i64: 8, 128>}, {transform_indices = @transform_2, window_bounds = array<i64: 8, 128>}]} {
    %c0 = arith.constant 0 : index
    %c0_0 = arith.constant 0 : index
    %0 = vector.load %arg1[%c0, %c0_0] : memref<8x8xf32, #tpu.memory_space<vmem>>, vector<8x8xf32>
    %c0_1 = arith.constant 0 : index
    %c0_2 = arith.constant 0 : index
    %1 = vector.load %arg2[%c0_1, %c0_2] : memref<8x128xf32, #tpu.memory_space<vmem>>, vector<8x128xf32>
    %cst = arith.constant dense<0.000000e+00> : vector<8x128xf32>
    %2 = tpu.matmul %0, %1, %cst {dimension_numbers = #tpu.dot_dimension_numbers<[1], [0], [0], [1], [0, 0, 1, 1], [], []>} : vector<8x8xf32>, vector<8x128xf32>, vector<8x128xf32> -> vector<8x128xf32>
    %c0_3 = arith.constant 0 : index
    %c0_4 = arith.constant 0 : index
    %3 = vector.load %arg3[%c0_3, %c0_4] : memref<8x128xf32, #tpu.memory_space<vmem>>, vector<8x128xf32>
    tpu.vector_store %arg3[%c0_3, %c0_4], %2 {strides = array<i32>} : memref<8x128xf32, #tpu.memory_space<vmem>>, vector<8x128xf32>,
    return
  }
  func.func @transform_0(%arg0: i32) -> (i32, i32) {
    %c0_i32 = arith.constant 0 : i32
    %c0_i32_0 = arith.constant 0 : i32
    %c0_i32_1 = arith.constant 0 : i32
    return %c0_i32, %c0_i32_0 : i32, i32
  }
  func.func @transform_1(%arg0: i32) -> (i32, i32) {
    %c0_i32 = arith.constant 0 : i32
    %c0_i32_0 = arith.constant 0 : i32
    return %c0_i32, %arg0 : i32, i32
  }
  func.func @transform_2(%arg0: i32) -> (i32, i32) {
    %c0_i32 = arith.constant 0 : i32
    %c0_i32_0 = arith.constant 0 : i32
    return %c0_i32, %arg0 : i32, i32
  }
}

module attributes {stable_mosaic.version = 11 : i64} {
  func.func @kernel(%arg0: i32, %arg1: memref<2x512xbf16, #tpu.memory_space<vmem>>, %arg2: memref<512x128xbf16, #tpu.memory_space<vmem>>, %arg3: memref<2x1xf32, #tpu.memory_space<vmem>>, %arg4: memref<2x128xf32, #tpu.memory_space<vmem>>, %arg5: memref<2x128xf32, #tpu.memory_space<vmem>>) attributes {dimension_semantics = [#tpu.dimension_semantics<parallel>], iteration_bounds = array<i64: 1>, scalar_prefetch = 0 : i64, scratch_operands = 0 : i64, tpu.core_type = #tpu.core_type<tc>, window_params = [{pipeline_mode = #tpu.pipeline_mode<synchronous>, transform_indices = @transform_0, window_bounds = array<i64: 2, 512>}, {transform_indices = @transform_1, window_bounds = array<i64: 512, 128>}, {pipeline_mode = #tpu.pipeline_mode<synchronous>, transform_indices = @transform_2, window_bounds = array<i64: 2, 1>}, {transform_indices = @transform_3, window_bounds = array<i64: 2, 128>}, {transform_indices = @transform_4, window_bounds = array<i64: 2, 128>}]} {
    %c0 = arith.constant 0 : index
    %c0_0 = arith.constant 0 : index
    %0 = vector.load %arg1[%c0, %c0_0] : memref<2x512xbf16, #tpu.memory_space<vmem>>, vector<2x512xbf16>
    %c0_1 = arith.constant 0 : index
    %c0_2 = arith.constant 0 : index
    %1 = vector.load %arg2[%c0_1, %c0_2] : memref<512x128xbf16, #tpu.memory_space<vmem>>, vector<512x128xbf16>
    %cst = arith.constant dense<0.000000e+00> : vector<2x128xf32>
    %2 = tpu.matmul %0, %1, %cst {dimension_numbers = #tpu.dot_dimension_numbers<[1], [0], [0], [1], [0, 0, 1, 1], [], []>} : vector<2x512xbf16>, vector<512x128xbf16>, vector<2x128xf32> -> vector<2x128xf32>
    %c0_3 = arith.constant 0 : index
    %c0_4 = arith.constant 0 : index
    %3 = vector.load %arg3[%c0_3, %c0_4] : memref<2x1xf32, #tpu.memory_space<vmem>>, vector<2x1xf32>
    %4 = vector.broadcast %3 : vector<2x1xf32> to vector<2x128xf32>
    %5 = arith.addf %2, %4 : vector<2x128xf32>
    %c0_5 = arith.constant 0 : index
    %c0_6 = arith.constant 0 : index
    %6 = vector.load %arg4[%c0_5, %c0_6] : memref<2x128xf32, #tpu.memory_space<vmem>>, vector<2x128xf32>
    %7 = arith.addf %5, %6 : vector<2x128xf32>
    %c0_7 = arith.constant 0 : index
    %c0_8 = arith.constant 0 : index
    %8 = vector.load %arg5[%c0_7, %c0_8] : memref<2x128xf32, #tpu.memory_space<vmem>>, vector<2x128xf32>
    tpu.vector_store %arg5[%c0_7, %c0_8], %7 {strides = array<i32>} : memref<2x128xf32, #tpu.memory_space<vmem>>, vector<2x128xf32>,
    return
  }
  func.func @transform_0(%arg0: i32) -> (i32, i32) {
    %c0_i32 = arith.constant 0 : i32
    %c0_i32_0 = arith.constant 0 : i32
    %c0_i32_1 = arith.constant 0 : i32
    return %c0_i32, %c0_i32_0 : i32, i32
  }
  func.func @transform_1(%arg0: i32) -> (i32, i32) {
    %c0_i32 = arith.constant 0 : i32
    %c0_i32_0 = arith.constant 0 : i32
    return %c0_i32, %arg0 : i32, i32
  }
  func.func @transform_2(%arg0: i32) -> (i32, i32) {
    %c0_i32 = arith.constant 0 : i32
    %c0_i32_0 = arith.constant 0 : i32
    %c0_i32_1 = arith.constant 0 : i32
    return %c0_i32, %c0_i32_0 : i32, i32
  }
  func.func @transform_3(%arg0: i32) -> (i32, i32) {
    %c0_i32 = arith.constant 0 : i32
    %c0_i32_0 = arith.constant 0 : i32
    return %c0_i32, %arg0 : i32, i32
  }
  func.func @transform_4(%arg0: i32) -> (i32, i32) {
    %c0_i32 = arith.constant 0 : i32
    %c0_i32_0 = arith.constant 0 : i32
    return %c0_i32, %arg0 : i32, i32
  }
}

module attributes {stable_mosaic.version = 11 : i64} {
  func.func @kernel(%arg0: i32, %arg1: memref<2x256xbf16, #tpu.memory_space<vmem>>, %arg2: memref<256x128xbf16, #tpu.memory_space<vmem>>, %arg3: memref<2x1xf32, #tpu.memory_space<vmem>>, %arg4: memref<2x128xf32, #tpu.memory_space<vmem>>, %arg5: memref<2x128xf32, #tpu.memory_space<vmem>>) attributes {dimension_semantics = [#tpu.dimension_semantics<parallel>], iteration_bounds = array<i64: 1>, scalar_prefetch = 0 : i64, scratch_operands = 0 : i64, tpu.core_type = #tpu.core_type<tc>, window_params = [{pipeline_mode = #tpu.pipeline_mode<synchronous>, transform_indices = @transform_0, window_bounds = array<i64: 2, 256>}, {transform_indices = @transform_1, window_bounds = array<i64: 256, 128>}, {pipeline_mode = #tpu.pipeline_mode<synchronous>, transform_indices = @transform_2, window_bounds = array<i64: 2, 1>}, {transform_indices = @transform_3, window_bounds = array<i64: 2, 128>}, {transform_indices = @transform_4, window_bounds = array<i64: 2, 128>}]} {
    %c0 = arith.constant 0 : index
    %c0_0 = arith.constant 0 : index
    %0 = vector.load %arg1[%c0, %c0_0] : memref<2x256xbf16, #tpu.memory_space<vmem>>, vector<2x256xbf16>
    %c0_1 = arith.constant 0 : index
    %c0_2 = arith.constant 0 : index
    %1 = vector.load %arg2[%c0_1, %c0_2] : memref<256x128xbf16, #tpu.memory_space<vmem>>, vector<256x128xbf16>
    %cst = arith.constant dense<0.000000e+00> : vector<2x128xf32>
    %2 = tpu.matmul %0, %1, %cst {dimension_numbers = #tpu.dot_dimension_numbers<[1], [0], [0], [1], [0, 0, 1, 1], [], []>} : vector<2x256xbf16>, vector<256x128xbf16>, vector<2x128xf32> -> vector<2x128xf32>
    %c0_3 = arith.constant 0 : index
    %c0_4 = arith.constant 0 : index
    %3 = vector.load %arg3[%c0_3, %c0_4] : memref<2x1xf32, #tpu.memory_space<vmem>>, vector<2x1xf32>
    %4 = vector.broadcast %3 : vector<2x1xf32> to vector<2x128xf32>
    %5 = arith.addf %2, %4 : vector<2x128xf32>
    %c0_5 = arith.constant 0 : index
    %c0_6 = arith.constant 0 : index
    %6 = vector.load %arg4[%c0_5, %c0_6] : memref<2x128xf32, #tpu.memory_space<vmem>>, vector<2x128xf32>
    %7 = arith.addf %5, %6 : vector<2x128xf32>
    %c0_7 = arith.constant 0 : index
    %c0_8 = arith.constant 0 : index
    %8 = vector.load %arg5[%c0_7, %c0_8] : memref<2x128xf32, #tpu.memory_space<vmem>>, vector<2x128xf32>
    tpu.vector_store %arg5[%c0_7, %c0_8], %7 {strides = array<i32>} : memref<2x128xf32, #tpu.memory_space<vmem>>, vector<2x128xf32>,
    return
  }
  func.func @transform_0(%arg0: i32) -> (i32, i32) {
    %c0_i32 = arith.constant 0 : i32
    %c0_i32_0 = arith.constant 0 : i32
    %c0_i32_1 = arith.constant 0 : i32
    return %c0_i32, %c0_i32_0 : i32, i32
  }
  func.func @transform_1(%arg0: i32) -> (i32, i32) {
    %c0_i32 = arith.constant 0 : i32
    %c0_i32_0 = arith.constant 0 : i32
    return %c0_i32, %arg0 : i32, i32
  }
  func.func @transform_2(%arg0: i32) -> (i32, i32) {
    %c0_i32 = arith.constant 0 : i32
    %c0_i32_0 = arith.constant 0 : i32
    %c0_i32_1 = arith.constant 0 : i32
    return %c0_i32, %c0_i32_0 : i32, i32
  }
  func.func @transform_3(%arg0: i32) -> (i32, i32) {
    %c0_i32 = arith.constant 0 : i32
    %c0_i32_0 = arith.constant 0 : i32
    return %c0_i32, %arg0 : i32, i32
  }
  func.func @transform_4(%arg0: i32) -> (i32, i32) {
    %c0_i32 = arith.constant 0 : i32
    %c0_i32_0 = arith.constant 0 : i32
    return %c0_i32, %arg0 : i32, i32
  }
}

module attributes {stable_mosaic.version = 11 : i64} {
  func.func @kernel(%arg0: i32, %arg1: memref<128x8xf32, #tpu.memory_space<vmem>>, %arg2: memref<8x128xf32, #tpu.memory_space<vmem>>, %arg3: memref<128x128xf32, #tpu.memory_space<vmem>>) attributes {dimension_semantics = [#tpu.dimension_semantics<parallel>], iteration_bounds = array<i64: 1>, scalar_prefetch = 0 : i64, scratch_operands = 0 : i64, tpu.core_type = #tpu.core_type<tc>, window_params = [{pipeline_mode = #tpu.pipeline_mode<synchronous>, transform_indices = @transform_0, window_bounds = array<i64: 128, 8>}, {transform_indices = @transform_1, window_bounds = array<i64: 8, 128>}, {transform_indices = @transform_2, window_bounds = array<i64: 128, 128>}]} {
    %c0 = arith.constant 0 : index
    %c0_0 = arith.constant 0 : index
    %0 = vector.load %arg1[%c0, %c0_0] : memref<128x8xf32, #tpu.memory_space<vmem>>, vector<128x8xf32>
    %c0_1 = arith.constant 0 : index
    %c0_2 = arith.constant 0 : index
    %1 = vector.load %arg2[%c0_1, %c0_2] : memref<8x128xf32, #tpu.memory_space<vmem>>, vector<8x128xf32>
    %cst = arith.constant dense<0.000000e+00> : vector<128x128xf32>
    %2 = tpu.matmul %0, %1, %cst {dimension_numbers = #tpu.dot_dimension_numbers<[1], [0], [0], [1], [0, 0, 1, 1], [], []>} : vector<128x8xf32>, vector<8x128xf32>, vector<128x128xf32> -> vector<128x128xf32>
    %c0_3 = arith.constant 0 : index
    %c0_4 = arith.constant 0 : index
    %3 = vector.load %arg3[%c0_3, %c0_4] : memref<128x128xf32, #tpu.memory_space<vmem>>, vector<128x128xf32>
    tpu.vector_store %arg3[%c0_3, %c0_4], %2 {strides = array<i32>} : memref<128x128xf32, #tpu.memory_space<vmem>>, vector<128x128xf32>,
    return
  }
  func.func @transform_0(%arg0: i32) -> (i32, i32) {
    %c0_i32 = arith.constant 0 : i32
    %c0_i32_0 = arith.constant 0 : i32
    %c0_i32_1 = arith.constant 0 : i32
    return %c0_i32, %c0_i32_0 : i32, i32
  }
  func.func @transform_1(%arg0: i32) -> (i32, i32) {
    %c0_i32 = arith.constant 0 : i32
    %c0_i32_0 = arith.constant 0 : i32
    return %c0_i32, %arg0 : i32, i32
  }
  func.func @transform_2(%arg0: i32) -> (i32, i32) {
    %c0_i32 = arith.constant 0 : i32
    %c0_i32_0 = arith.constant 0 : i32
    return %c0_i32, %arg0 : i32, i32
  }
}

</mosaic_0001>

<bundles_post_ra>
// kernel: decoder_forward.7
= control target key start
LH: loop header
LB: loop body
LE: loop exit
PB: predicated region body
PF: predicated region fallthrough
CT: control target
= control target key end

     0   :  { %vm13_vm0 = vcmask 64512   ;;  %v102_v0 = vmov 0.0   ;;  %vm103_vm1 = vmmov 0   ;;  %s128_s1 = inlined_call_operand.vmem [shape: f32[8,128], index: 1, kind: input, shape index: {}]   ;;  %s129_s0 = inlined_call_operand.vmem [shape: f32[8,8], index: 0, kind: input, shape index: {}]   ;;  %s130_s2 = inlined_call_operand.vmem [shape: f32[8,128], index: 2, kind: output, shape index: {}]  }
   0x1   :  { %95 = vmatprep.subr.mxu0 %v102_v0  ;;  %v12_v1 = vld [vmem:[%s128_s1] sm:$0xff]  ;;  %97 = vmatprep.mubr.msk.f32.mxu0 %vm103_vm1, %v102_v0 }
   0x2   :  { %v11_v2 = vld [vmem:[%s129_s0] sm:$0xff]  ;;  %96 = vmatpush3.msra.mxu0 %v12_v1 }
   0x3   :  { %98 = vmatmul.mubr.msk.f32.vlgmr.msra.gmra.mrb[0].mxu0 %vm13_vm0, %v11_v2 }
  0xd6   :  { %v83_v3 = vpop.f32.mrb[0].mxu0 }
  0xd7   :  { %87 = vst [vmem:[%s130_s2] sm:$0xff] %v83_v3  ;;  %v99_v4 = vpop.f32.mrb[1].mxu0 }

// kernel: decoder_forward.6
= control target key start
LH: loop header
LB: loop body
LE: loop exit
PB: predicated region body
PF: predicated region fallthrough
CT: control target
= control target key end

     0   :  { %v515_v1 = vmov 0   ;;  %v516_v23 = vmov 1966171168   ;;  %v98_v25 = vlaneseq  ;;  %s642_s1 = inlined_call_operand.vmem [shape: bf16[512,128], index: 1, kind: input, shape index: {}]   ;;  %s643_s0 = inlined_call_operand.vmem [shape: bf16[2,512], index: 0, kind: input, shape index: {}]   ;;  %s644_s2 = inlined_call_operand.vmem [shape: f32[2,1], index: 2, kind: input, shape index: {}]   ;;  %s645_s3 = inlined_call_operand.vmem [shape: f32[2,128], index: 3, kind: output, shape index: {}]  }
   0x1   :  { %v479_v0 = vld [vmem:[%s642_s1 + $0x40] sm:$0xff]   ;;  %478 = vset.pattern.permute.xlu0 %v515_v1  ;;  %v483_v5 = vld [vmem:[%s642_s1 + $0x48] sm:$0xff]   ;;  %v487_v9 = vld [vmem:[%s642_s1 + $0x50] sm:$0xff]   ;;  %v96_v24 = vunpack.c.l.s4 %v516_v23 }
   0x2   :  { %v480_v2 = vld [vmem:[%s642_s1 + $0xc0] sm:$0xff]   ;;  %432 = vmatprep.subr.bf16.mxu0 %v479_v0  ;;  %v484_v6 = vld [vmem:[%s642_s1 + $0xc8] sm:$0xff]   ;;  %v488_v10 = vld [vmem:[%s642_s1 + $0xd0] sm:$0xff]   ;;  %v99_v31 = vshrl.u32 %v98_v25, 7 }
   0x3   :  { %v481_v3 = vld [vmem:[%s642_s1] sm:$0xff]   ;;  %454 = vmatprep.subr.bf16.mxu1 %v480_v2  ;;  %v485_v7 = vld [vmem:[%s642_s1 + $0x8] sm:$0xff]   ;;  %v489_v11 = vld [vmem:[%s642_s1 + $0x10] sm:$0xff]   ;;  %v97_v30 = vunpack.c.0.s8 %v96_v24 }
   0x4   :  { %v482_v4 = vld [vmem:[%s642_s1 + $0x80] sm:$0xff]   ;;  %433 = vmatpush3.bf16.msra.mxu0 %v481_v3  ;;  %v486_v8 = vld [vmem:[%s642_s1 + $0x88] sm:$0xff]   ;;  %v490_v12 = vld [vmem:[%s642_s1 + $0x90] sm:$0xff]  }
   0x5   :  { %455 = vmatpush3.bf16.msra.mxu1 %v482_v4  ;;  %434 = vmatprep.subr.bf16.mxu0 %v483_v5  ;;  %v491_v13 = vld [vmem:[%s642_s1 + $0x58] sm:$0xff]   ;;  %v495_v17 = vld [vmem:[%s642_s1 + $0x60] sm:$0xff]   ;;  %v499_v21 = vld [vmem:[%s642_s1 + $0x68] sm:$0xff]   ;;  %v100_v36 = vsub.s32 %v97_v30, %v99_v31 }
   0x6   :  { %456 = vmatprep.subr.bf16.mxu1 %v484_v6  ;;  %v492_v14 = vld [vmem:[%s642_s1 + $0xd8] sm:$0xff]   ;;  %v496_v18 = vld [vmem:[%s642_s1 + $0xe0] sm:$0xff]   ;;  %v500_v22 = vld [vmem:[%s642_s1 + $0xe8] sm:$0xff]  }
   0x7   :  { %v493_v15 = vld [vmem:[%s642_s1 + $0x18] sm:$0xff]   ;;  %v497_v19 = vld [vmem:[%s642_s1 + $0x20] sm:$0xff]   ;;  %v501_v26 = vld [vmem:[%s642_s1 + $0x28] sm:$0xff]  }
   0x8   :  { %435 = vmatpush3.bf16.msra.mxu0 %v485_v7  ;;  %v494_v16 = vld [vmem:[%s642_s1 + $0x98] sm:$0xff]   ;;  %v498_v20 = vld [vmem:[%s642_s1 + $0xa0] sm:$0xff]   ;;  %v502_v27 = vld [vmem:[%s642_s1 + $0xa8] sm:$0xff]  }
   0x9   :  { %457 = vmatpush3.bf16.msra.mxu1 %v486_v8  ;;  %436 = vmatprep.subr.bf16.mxu0 %v487_v9  ;;  %v503_v28 = vld [vmem:[%s642_s1 + $0x70] sm:$0xff]   ;;  %v507_v34 = vld [vmem:[%s642_s1 + $0x78] sm:$0xff]   ;;  %v398_v39 = vld.sshfl [vmem:[%s643_s0] sm:$0x33 pattern:$0x75316420] }
   0xa   :  { %458 = vmatprep.subr.bf16.mxu1 %v488_v10  ;;  %v504_v29 = vld [vmem:[%s642_s1 + $0xf0] sm:$0xff]   ;;  %v508_v35 = vld [vmem:[%s642_s1 + $0xf8] sm:$0xff]   ;;  %v80_v40 = vld [vmem:[%s644_s2] sm:$0x3]  ;;  %v94_v41 = vcombine.high %v398_v39, %v398_v39  ;;  %v101_v42 = vrot.slane %v398_v39, %v100_v36 }
   0xb   :  { %v505_v32 = vld [vmem:[%s642_s1 + $0x30] sm:$0xff]   ;;  %v509_v37 = vld [vmem:[%s642_s1 + $0x38] sm:$0xff]   ;;  %83 = vperm.xlu0 %478, %v80_v40  }
   0xc   :  { %437 = vmatpush3.bf16.msra.mxu0 %v489_v11  ;;  %v506_v33 = vld [vmem:[%s642_s1 + $0xb0] sm:$0xff]   ;;  %v510_v38 = vld [vmem:[%s642_s1 + $0xb8] sm:$0xff]   ;;  %v108_v43 = vrot.slane %v94_v41, %v100_v36  ;;  %v109_v44 = vcombine.high %v101_v42, %v101_v42 }
   0xd   :  { %459 = vmatpush3.bf16.msra.mxu1 %v490_v12  ;;  %438 = vmatprep.subr.bf16.mxu0 %v491_v13 }
   0xe   :  { %460 = vmatprep.subr.bf16.mxu1 %v492_v14  ;;  %339 = vmatprep.mubr.bf16.mxu0 %v108_v43  ;;  %v110_v45 = vcombine.high %v108_v43, %v108_v43 }
  0x10   :  { %439 = vmatpush3.bf16.msra.mxu0 %v493_v15  ;;  %379 = vmatprep.mubr.bf16.mxu1 %v110_v45 }
  0x11   :  { %461 = vmatpush3.bf16.msra.mxu1 %v494_v16  ;;  %440 = vmatprep.subr.bf16.mxu0 %v495_v17 }
  0x12   :  { %462 = vmatprep.subr.bf16.mxu1 %v496_v18 }
  0x14   :  { %441 = vmatpush3.bf16.msra.mxu0 %v497_v19 }
  0x15   :  { %463 = vmatpush3.bf16.msra.mxu1 %v498_v20  ;;  %442 = vmatprep.subr.bf16.mxu0 %v499_v21 }
  0x16   :  { %464 = vmatprep.subr.bf16.mxu1 %v500_v22 }
  0x18   :  { %443 = vmatpush3.bf16.msra.mxu0 %v501_v26 }
  0x19   :  { %465 = vmatpush3.bf16.msra.mxu1 %v502_v27  ;;  %444 = vmatprep.subr.bf16.mxu0 %v503_v28 }
  0x1a   :  { %466 = vmatprep.subr.bf16.mxu1 %v504_v29 }
  0x1c   :  { %445 = vmatpush3.bf16.msra.mxu0 %v505_v32 }
  0x1d   :  { %467 = vmatpush3.bf16.msra.mxu1 %v506_v33  ;;  %446 = vmatprep.subr.bf16.mxu0 %v507_v34 }
  0x1e   :  { %468 = vmatprep.subr.bf16.mxu1 %v508_v35 }
  0x20   :  { %447 = vmatpush3.bf16.msra.mxu0 %v509_v37 }
  0x21   :  { %469 = vmatpush3.bf16.msra.mxu1 %v510_v38 }
  0x23   :  { %340 = vmatmul.mubr.bf16.vlgmr.msra.gmra.mrb[0].mxu0 %v101_v42 }
  0x24   :  { %380 = vmatmul.mubr.bf16.vlgmr.msra.gmra.mrb[0].mxu1 %v109_v44 }
  0x8a   :  { %v84_v48 = vpop.permute.xlu0 %83 }
  0xf6   :  { %v448_v46 = vpop.f32.mrb[0].mxu0 }
  0xf7   :  { %v449_v47 = vpop.f32.mrb[1].mxu0  ;;  %v470_v49 = vpop.f32.mrb[0].mxu1 }
  0xf8   :  { %v450_v50 = vadd.f32 %v449_v47, %v448_v46  ;;  %v451_v51 = vpop.f32.mrb[2].mxu0  ;;  %v471_v52 = vpop.f32.mrb[1].mxu1 }
  0xf9   :  { %v452_v53 = vpop.f32.mrb[3].mxu0  ;;  %v472_v54 = vadd.f32 %v471_v52, %v470_v49  ;;  %v473_v55 = vpop.f32.mrb[2].mxu1 }
  0xfa   :  { %v342_v56 = vadd.f32 %v450_v50, %v84_v48  ;;  %v474_v57 = vpop.f32.mrb[3].mxu1 }
  0xfc   :  { %v382_v58 = vadd.f32 %v472_v54, %v342_v56 }
  0xfe   :  { %v431_v59 = vmul.f32 -1.442695, %v382_v58 }
 0x100   :  { %511 = vpow2.f32 %v431_v59 }
 0x10a   :  { %v512_v60 = vpop.eup %511 }
 0x10b   :  { %v390_v61 = vadd.f32 1.0, %v512_v60 }
 0x10d   :  { %513 = vrcp.f32 %v390_v61 }
 0x117   :  { %v514_v62 = vpop.eup %513 }
 0x118   :  { %393 = vst [vmem:[%s645_s3] sm:$0x3] %v514_v62 }

// kernel: decoder_forward.8
= control target key start
LH: loop header
LB: loop body
LE: loop exit
PB: predicated region body
PF: predicated region fallthrough
CT: control target
= control target key end

     0   :  { %v509_v1 = vmov 0   ;;  %v510_v23 = vmov 1966171168   ;;  %v101_v25 = vlaneseq  ;;  %s644_s1 = inlined_call_operand.vmem [shape: bf16[512,128], index: 1, kind: input, shape index: {}]   ;;  %s645_s0 = inlined_call_operand.vmem [shape: bf16[2,512], index: 0, kind: input, shape index: {}]   ;;  %s646_s2 = inlined_call_operand.vmem [shape: f32[2,1], index: 2, kind: input, shape index: {}]   ;;  %s647_s3 = inlined_call_operand.vmem [shape: f32[2,128], index: 3, kind: input, shape index: {}]   ;;  %s648_s4 = inlined_call_operand.vmem [shape: f32[2,128], index: 4, kind: output, shape index: {}]  }
   0x1   :  { %v477_v0 = vld [vmem:[%s644_s1 + $0x40] sm:$0xff]   ;;  %476 = vset.pattern.permute.xlu0 %v509_v1  ;;  %v481_v5 = vld [vmem:[%s644_s1 + $0x48] sm:$0xff]   ;;  %v485_v9 = vld [vmem:[%s644_s1 + $0x50] sm:$0xff]   ;;  %v99_v24 = vunpack.c.l.s4 %v510_v23 }
   0x2   :  { %v478_v2 = vld [vmem:[%s644_s1 + $0xc0] sm:$0xff]   ;;  %430 = vmatprep.subr.bf16.mxu0 %v477_v0  ;;  %v482_v6 = vld [vmem:[%s644_s1 + $0xc8] sm:$0xff]   ;;  %v486_v10 = vld [vmem:[%s644_s1 + $0xd0] sm:$0xff]   ;;  %v102_v31 = vshrl.u32 %v101_v25, 7 }
   0x3   :  { %v479_v3 = vld [vmem:[%s644_s1] sm:$0xff]   ;;  %452 = vmatprep.subr.bf16.mxu1 %v478_v2  ;;  %v483_v7 = vld [vmem:[%s644_s1 + $0x8] sm:$0xff]   ;;  %v487_v11 = vld [vmem:[%s644_s1 + $0x10] sm:$0xff]   ;;  %v100_v30 = vunpack.c.0.s8 %v99_v24 }
   0x4   :  { %v480_v4 = vld [vmem:[%s644_s1 + $0x80] sm:$0xff]   ;;  %431 = vmatpush3.bf16.msra.mxu0 %v479_v3  ;;  %v484_v8 = vld [vmem:[%s644_s1 + $0x88] sm:$0xff]   ;;  %v488_v12 = vld [vmem:[%s644_s1 + $0x90] sm:$0xff]  }
   0x5   :  { %453 = vmatpush3.bf16.msra.mxu1 %v480_v4  ;;  %432 = vmatprep.subr.bf16.mxu0 %v481_v5  ;;  %v489_v13 = vld [vmem:[%s644_s1 + $0x58] sm:$0xff]   ;;  %v493_v17 = vld [vmem:[%s644_s1 + $0x60] sm:$0xff]   ;;  %v497_v21 = vld [vmem:[%s644_s1 + $0x68] sm:$0xff]   ;;  %v103_v36 = vsub.s32 %v100_v30, %v102_v31 }
   0x6   :  { %454 = vmatprep.subr.bf16.mxu1 %v482_v6  ;;  %v490_v14 = vld [vmem:[%s644_s1 + $0xd8] sm:$0xff]   ;;  %v494_v18 = vld [vmem:[%s644_s1 + $0xe0] sm:$0xff]   ;;  %v498_v22 = vld [vmem:[%s644_s1 + $0xe8] sm:$0xff]  }
   0x7   :  { %v491_v15 = vld [vmem:[%s644_s1 + $0x18] sm:$0xff]   ;;  %v495_v19 = vld [vmem:[%s644_s1 + $0x20] sm:$0xff]   ;;  %v499_v26 = vld [vmem:[%s644_s1 + $0x28] sm:$0xff]  }
   0x8   :  { %433 = vmatpush3.bf16.msra.mxu0 %v483_v7  ;;  %v492_v16 = vld [vmem:[%s644_s1 + $0x98] sm:$0xff]   ;;  %v496_v20 = vld [vmem:[%s644_s1 + $0xa0] sm:$0xff]   ;;  %v500_v27 = vld [vmem:[%s644_s1 + $0xa8] sm:$0xff]  }
   0x9   :  { %455 = vmatpush3.bf16.msra.mxu1 %v484_v8  ;;  %434 = vmatprep.subr.bf16.mxu0 %v485_v9  ;;  %v501_v28 = vld [vmem:[%s644_s1 + $0x70] sm:$0xff]   ;;  %v505_v34 = vld [vmem:[%s644_s1 + $0x78] sm:$0xff]   ;;  %v397_v39 = vld.sshfl [vmem:[%s645_s0] sm:$0x33 pattern:$0x75316420] }
   0xa   :  { %456 = vmatprep.subr.bf16.mxu1 %v486_v10  ;;  %v502_v29 = vld [vmem:[%s644_s1 + $0xf0] sm:$0xff]   ;;  %v506_v35 = vld [vmem:[%s644_s1 + $0xf8] sm:$0xff]   ;;  %v83_v40 = vld [vmem:[%s646_s2] sm:$0x3]  ;;  %v97_v41 = vcombine.high %v397_v39, %v397_v39  ;;  %v104_v42 = vrot.slane %v397_v39, %v103_v36 }
   0xb   :  { %v503_v32 = vld [vmem:[%s644_s1 + $0x30] sm:$0xff]   ;;  %v507_v37 = vld [vmem:[%s644_s1 + $0x38] sm:$0xff]   ;;  %86 = vperm.xlu0 %476, %v83_v40   ;;  %v390_v57 = vld [vmem:[%s647_s3] sm:$0x3] }
   0xc   :  { %435 = vmatpush3.bf16.msra.mxu0 %v487_v11  ;;  %v504_v33 = vld [vmem:[%s644_s1 + $0xb0] sm:$0xff]   ;;  %v508_v38 = vld [vmem:[%s644_s1 + $0xb8] sm:$0xff]   ;;  %v111_v43 = vrot.slane %v97_v41, %v103_v36  ;;  %v112_v44 = vcombine.high %v104_v42, %v104_v42 }
   0xd   :  { %457 = vmatpush3.bf16.msra.mxu1 %v488_v12  ;;  %436 = vmatprep.subr.bf16.mxu0 %v489_v13 }
   0xe   :  { %458 = vmatprep.subr.bf16.mxu1 %v490_v14  ;;  %342 = vmatprep.mubr.bf16.mxu0 %v111_v43  ;;  %v113_v45 = vcombine.high %v111_v43, %v111_v43 }
  0x10   :  { %437 = vmatpush3.bf16.msra.mxu0 %v491_v15  ;;  %382 = vmatprep.mubr.bf16.mxu1 %v113_v45 }
  0x11   :  { %459 = vmatpush3.bf16.msra.mxu1 %v492_v16  ;;  %438 = vmatprep.subr.bf16.mxu0 %v493_v17 }
  0x12   :  { %460 = vmatprep.subr.bf16.mxu1 %v494_v18 }
  0x14   :  { %439 = vmatpush3.bf16.msra.mxu0 %v495_v19 }
  0x15   :  { %461 = vmatpush3.bf16.msra.mxu1 %v496_v20  ;;  %440 = vmatprep.subr.bf16.mxu0 %v497_v21 }
  0x16   :  { %462 = vmatprep.subr.bf16.mxu1 %v498_v22 }
  0x18   :  { %441 = vmatpush3.bf16.msra.mxu0 %v499_v26 }
  0x19   :  { %463 = vmatpush3.bf16.msra.mxu1 %v500_v27  ;;  %442 = vmatprep.subr.bf16.mxu0 %v501_v28 }
  0x1a   :  { %464 = vmatprep.subr.bf16.mxu1 %v502_v29 }
  0x1c   :  { %443 = vmatpush3.bf16.msra.mxu0 %v503_v32 }
  0x1d   :  { %465 = vmatpush3.bf16.msra.mxu1 %v504_v33  ;;  %444 = vmatprep.subr.bf16.mxu0 %v505_v34 }
  0x1e   :  { %466 = vmatprep.subr.bf16.mxu1 %v506_v35 }
  0x20   :  { %445 = vmatpush3.bf16.msra.mxu0 %v507_v37 }
  0x21   :  { %467 = vmatpush3.bf16.msra.mxu1 %v508_v38 }
  0x23   :  { %343 = vmatmul.mubr.bf16.vlgmr.msra.gmra.mrb[0].mxu0 %v104_v42 }
  0x24   :  { %383 = vmatmul.mubr.bf16.vlgmr.msra.gmra.mrb[0].mxu1 %v112_v44 }
  0x8a   :  { %v87_v48 = vpop.permute.xlu0 %86 }
  0xf6   :  { %v446_v46 = vpop.f32.mrb[0].mxu0 }
  0xf7   :  { %v447_v47 = vpop.f32.mrb[1].mxu0  ;;  %v468_v49 = vpop.f32.mrb[0].mxu1 }
  0xf8   :  { %v448_v50 = vadd.f32 %v447_v47, %v446_v46  ;;  %v449_v51 = vpop.f32.mrb[2].mxu0  ;;  %v469_v52 = vpop.f32.mrb[1].mxu1 }
  0xf9   :  { %v450_v53 = vpop.f32.mrb[3].mxu0  ;;  %v470_v54 = vadd.f32 %v469_v52, %v468_v49  ;;  %v471_v55 = vpop.f32.mrb[2].mxu1 }
  0xfa   :  { %v345_v56 = vadd.f32 %v448_v50, %v87_v48  ;;  %v472_v58 = vpop.f32.mrb[3].mxu1 }
  0xfc   :  { %v385_v59 = vadd.f32 %v470_v54, %v345_v56 }
  0xfe   :  { %v391_v60 = vadd.f32 %v390_v57, %v385_v59 }
 0x100   :  { %392 = vst [vmem:[%s648_s4] sm:$0x3] %v391_v60 }

// kernel: decoder_forward.10
= control target key start
LH: loop header
LB: loop body
LE: loop exit
PB: predicated region body
PF: predicated region fallthrough
CT: control target
= control target key end

     0   :  { %v283_v1 = vmov 0   ;;  %v284_v7 = vmov 1966171168   ;;  %v69_v9 = vlaneseq  ;;  %s370_s1 = inlined_call_operand.vmem [shape: bf16[256,128], index: 1, kind: input, shape index: {}]   ;;  %s371_s0 = inlined_call_operand.vmem [shape: bf16[2,256], index: 0, kind: input, shape index: {}]   ;;  %s372_s2 = inlined_call_operand.vmem [shape: f32[2,1], index: 2, kind: input, shape index: {}]   ;;  %s373_s3 = inlined_call_operand.vmem [shape: f32[2,128], index: 3, kind: input, shape index: {}]   ;;  %s374_s4 = inlined_call_operand.vmem [shape: f32[2,128], index: 4, kind: output, shape index: {}]  }
   0x1   :  { %v267_v0 = vld [vmem:[%s370_s1 + $0x40] sm:$0xff]   ;;  %266 = vset.pattern.permute.xlu0 %v283_v1  ;;  %v269_v3 = vld [vmem:[%s370_s1 + $0x48] sm:$0xff]   ;;  %v271_v5 = vld [vmem:[%s370_s1 + $0x50] sm:$0xff]   ;;  %v67_v8 = vunpack.c.l.s4 %v284_v7 }
   0x2   :  { %v268_v2 = vld [vmem:[%s370_s1] sm:$0xff]   ;;  %242 = vmatprep.subr.bf16.mxu0 %v267_v0  ;;  %v270_v4 = vld [vmem:[%s370_s1 + $0x8] sm:$0xff]   ;;  %v272_v6 = vld [vmem:[%s370_s1 + $0x10] sm:$0xff]   ;;  %v70_v13 = vshrl.u32 %v69_v9, 7 }
   0x3   :  { %243 = vmatpush3.bf16.msra.mxu0 %v268_v2  ;;  %v273_v10 = vld [vmem:[%s370_s1 + $0x58] sm:$0xff]   ;;  %v68_v12 = vunpack.c.0.s8 %v67_v8  ;;  %v275_v14 = vld [vmem:[%s370_s1 + $0x60] sm:$0xff]   ;;  %v277_v16 = vld [vmem:[%s370_s1 + $0x68] sm:$0xff]  }
   0x4   :  { %244 = vmatprep.subr.bf16.mxu0 %v269_v3  ;;  %v274_v11 = vld [vmem:[%s370_s1 + $0x18] sm:$0xff]   ;;  %v276_v15 = vld [vmem:[%s370_s1 + $0x20] sm:$0xff]   ;;  %v278_v21 = vld [vmem:[%s370_s1 + $0x28] sm:$0xff]  }
   0x5   :  { %v71_v17 = vsub.s32 %v68_v12, %v70_v13  ;;  %v225_v18 = vld.sshfl [vmem:[%s371_s0] sm:$0x11 pattern:$0x75316420]  ;;  %v279_v23 = vld [vmem:[%s370_s1 + $0x70] sm:$0xff]   ;;  %v281_v25 = vld [vmem:[%s370_s1 + $0x78] sm:$0xff]  }
   0x6   :  { %v51_v19 = vld [vmem:[%s372_s2] sm:$0x3]  ;;  %v65_v20 = vcombine.high %v225_v18, %v225_v18  ;;  %v280_v24 = vld [vmem:[%s370_s1 + $0x30] sm:$0xff]   ;;  %v282_v26 = vld [vmem:[%s370_s1 + $0x38] sm:$0xff]  }
   0x7   :  { %245 = vmatpush3.bf16.msra.mxu0 %v270_v4  ;;  %54 = vperm.xlu0 %266, %v51_v19   ;;  %v72_v27 = vrot.slane %v225_v18, %v71_v17  ;;  %v218_v33 = vld [vmem:[%s373_s3] sm:$0x3] }
   0x8   :  { %246 = vmatprep.subr.bf16.mxu0 %v271_v5  ;;  %v79_v22 = vrot.slane %v65_v20, %v71_v17 }
   0xa   :  { %210 = vmatprep.mubr.bf16.mxu0 %v79_v22 }
   0xb   :  { %247 = vmatpush3.bf16.msra.mxu0 %v272_v6 }
   0xc   :  { %248 = vmatprep.subr.bf16.mxu0 %v273_v10 }
   0xf   :  { %249 = vmatpush3.bf16.msra.mxu0 %v274_v11 }
  0x10   :  { %250 = vmatprep.subr.bf16.mxu0 %v275_v14 }
  0x13   :  { %251 = vmatpush3.bf16.msra.mxu0 %v276_v15 }
  0x14   :  { %252 = vmatprep.subr.bf16.mxu0 %v277_v16 }
  0x17   :  { %253 = vmatpush3.bf16.msra.mxu0 %v278_v21 }
  0x18   :  { %254 = vmatprep.subr.bf16.mxu0 %v279_v23 }
  0x1b   :  { %255 = vmatpush3.bf16.msra.mxu0 %v280_v24 }
  0x1c   :  { %256 = vmatprep.subr.bf16.mxu0 %v281_v25 }
  0x1f   :  { %257 = vmatpush3.bf16.msra.mxu0 %v282_v26 }
  0x22   :  { %211 = vmatmul.mubr.bf16.vlgmr.msra.gmra.mrb[0].mxu0 %v72_v27 }
  0x86   :  { %v55_v30 = vpop.permute.xlu0 %54 }
  0xf5   :  { %v258_v28 = vpop.f32.mrb[0].mxu0 }
  0xf6   :  { %v259_v29 = vpop.f32.mrb[1].mxu0 }
  0xf7   :  { %v260_v31 = vadd.f32 %v259_v29, %v258_v28  ;;  %v261_v32 = vpop.f32.mrb[2].mxu0 }
  0xf8   :  { %v262_v34 = vpop.f32.mrb[3].mxu0 }
  0xf9   :  { %v213_v35 = vadd.f32 %v260_v31, %v55_v30 }
  0xfb   :  { %v219_v36 = vadd.f32 %v218_v33, %v213_v35 }
  0xfd   :  { %220 = vst [vmem:[%s374_s4] sm:$0x3] %v219_v36 }

// kernel: decoder_forward.11
= control target key start
LH: loop header
LB: loop body
LE: loop exit
PB: predicated region body
PF: predicated region fallthrough
CT: control target
= control target key end

     0   :  { %vm28_vm0 = vcmask 64512   ;;  %s433_s1 = inlined_call_operand.vmem [shape: f32[8,128], index: 1, kind: input, shape index: {}]   ;;  %s434_s0 = inlined_call_operand.vmem [shape: f32[128,8], index: 0, kind: input, shape index: {}]   ;;  %s435_s2 = inlined_call_operand.vmem [shape: f32[128,128], index: 2, kind: output, shape index: {}]  }
   0x1   :  { %v27_v0 = vld [vmem:[%s433_s1] sm:$0xff]  ;;  %v12_v3 = vld [vmem:[%s434_s0 + $0x8] sm:$0xff]  ;;  %v13_v5 = vld [vmem:[%s434_s0 + $0x10] sm:$0xff] }
   0x2   :  { %v11_v1 = vld [vmem:[%s434_s0] sm:$0xff]  ;;  %275 = vmatprep.subr.mxu0 %v27_v0  ;;  %301 = vmatprep.subr.mxu1 %v27_v0  ;;  %v20_v4 = vld [vmem:[%s434_s0 + $0x48] sm:$0xff]  ;;  %v21_v6 = vld [vmem:[%s434_s0 + $0x50] sm:$0xff] }
   0x3   :  { %v19_v2 = vld [vmem:[%s434_s0 + $0x40] sm:$0xff]  ;;  %276 = vmatpush3.msra.mxu0 %v27_v0  ;;  %302 = vmatpush3.msra.mxu1 %v27_v0  ;;  %v14_v7 = vld [vmem:[%s434_s0 + $0x18] sm:$0xff]  ;;  %v16_v11 = vld [vmem:[%s434_s0 + $0x28] sm:$0xff] }
   0x4   :  { %277 = vmatprep.mubr.msk.f32.mxu0 %vm28_vm0, %v11_v1  ;;  %289 = vmatprep.mubr.msk.f32.mxu1 %vm28_vm0, %v19_v2  ;;  %v22_v8 = vld [vmem:[%s434_s0 + $0x58] sm:$0xff]  ;;  %v15_v9 = vld [vmem:[%s434_s0 + $0x20] sm:$0xff]  ;;  %v24_v12 = vld [vmem:[%s434_s0 + $0x68] sm:$0xff] }
   0x5   :  { %278 = vmatmul.mubr.msk.f32.vlgmr.msra.gmra.mrb[0].mxu0 %vm28_vm0, %v12_v3  ;;  %290 = vmatmul.mubr.msk.f32.vlgmr.msra.gmra.mrb[0].mxu1 %vm28_vm0, %v20_v4  ;;  %v23_v10 = vld [vmem:[%s434_s0 + $0x60] sm:$0xff]  ;;  %v17_v13 = vld [vmem:[%s434_s0 + $0x30] sm:$0xff]  ;;  %v18_v15 = vld [vmem:[%s434_s0 + $0x38] sm:$0xff] }
   0x6   :  { %280 = vmatprep.mubr.msk.f32.mxu0 %vm28_vm0, %v13_v5  ;;  %292 = vmatprep.mubr.msk.f32.mxu1 %vm28_vm0, %v21_v6  ;;  %v25_v14 = vld [vmem:[%s434_s0 + $0x70] sm:$0xff]  ;;  %v26_v16 = vld [vmem:[%s434_s0 + $0x78] sm:$0xff] }
   0x9   :  { %281 = vmatmul.mubr.msk.f32.gmra.mrb[2].mxu0 %vm28_vm0, %v14_v7  ;;  %293 = vmatmul.mubr.msk.f32.gmra.mrb[2].mxu1 %vm28_vm0, %v22_v8 }
   0xa   :  { %283 = vmatprep.mubr.msk.f32.mxu0 %vm28_vm0, %v15_v9  ;;  %295 = vmatprep.mubr.msk.f32.mxu1 %vm28_vm0, %v23_v10 }
   0xd   :  { %284 = vmatmul.mubr.msk.f32.gmra.mrb[4].mxu0 %vm28_vm0, %v16_v11  ;;  %296 = vmatmul.mubr.msk.f32.gmra.mrb[4].mxu1 %vm28_vm0, %v24_v12 }
   0xe   :  { %286 = vmatprep.mubr.msk.f32.mxu0 %vm28_vm0, %v17_v13  ;;  %298 = vmatprep.mubr.msk.f32.mxu1 %vm28_vm0, %v25_v14 }
  0x11   :  { %287 = vmatmul.mubr.msk.f32.gmra.mrb[6].mxu0 %vm28_vm0, %v18_v15  ;;  %299 = vmatmul.mubr.msk.f32.gmra.mrb[6].mxu1 %vm28_vm0, %v26_v16 }
  0xd8   :  { %v279_v17 = vpop.f32.mrb[0].mxu0  ;;  %v291_v18 = vpop.f32.mrb[0].mxu1 }
  0xd9   :  { %223 = vst [vmem:[%s435_s2 + $0x8] sm:$0xff] %v279_v17  ;;  %231 = vst [vmem:[%s435_s2 + $0x48] sm:$0xff] %v291_v18  ;;  %v143_v19 = vpop.f32.mrb[1].mxu0  ;;  %v183_v20 = vpop.f32.mrb[1].mxu1 }
  0xda   :  { %222 = vst [vmem:[%s435_s2] sm:$0xff] %v143_v19  ;;  %230 = vst [vmem:[%s435_s2 + $0x40] sm:$0xff] %v183_v20 }
  0xdc   :  { %v282_v21 = vpop.f32.mrb[2].mxu0  ;;  %v294_v22 = vpop.f32.mrb[2].mxu1 }
  0xdd   :  { %225 = vst [vmem:[%s435_s2 + $0x18] sm:$0xff] %v282_v21  ;;  %233 = vst [vmem:[%s435_s2 + $0x58] sm:$0xff] %v294_v22  ;;  %v153_v23 = vpop.f32.mrb[3].mxu0  ;;  %v193_v24 = vpop.f32.mrb[3].mxu1 }
  0xde   :  { %224 = vst [vmem:[%s435_s2 + $0x10] sm:$0xff] %v153_v23  ;;  %232 = vst [vmem:[%s435_s2 + $0x50] sm:$0xff] %v193_v24 }
  0xe0   :  { %v285_v25 = vpop.f32.mrb[4].mxu0  ;;  %v297_v26 = vpop.f32.mrb[4].mxu1 }
  0xe1   :  { %227 = vst [vmem:[%s435_s2 + $0x28] sm:$0xff] %v285_v25  ;;  %235 = vst [vmem:[%s435_s2 + $0x68] sm:$0xff] %v297_v26  ;;  %v163_v27 = vpop.f32.mrb[5].mxu0  ;;  %v203_v28 = vpop.f32.mrb[5].mxu1 }
  0xe2   :  { %226 = vst [vmem:[%s435_s2 + $0x20] sm:$0xff] %v163_v27  ;;  %234 = vst [vmem:[%s435_s2 + $0x60] sm:$0xff] %v203_v28 }
  0xe4   :  { %v288_v29 = vpop.f32.mrb[6].mxu0  ;;  %v300_v30 = vpop.f32.mrb[6].mxu1 }
  0xe5   :  { %229 = vst [vmem:[%s435_s2 + $0x38] sm:$0xff] %v288_v29  ;;  %237 = vst [vmem:[%s435_s2 + $0x78] sm:$0xff] %v300_v30  ;;  %v173_v31 = vpop.f32.mrb[7].mxu0  ;;  %v213_v32 = vpop.f32.mrb[7].mxu1 }
  0xe6   :  { %228 = vst [vmem:[%s435_s2 + $0x30] sm:$0xff] %v173_v31  ;;  %236 = vst [vmem:[%s435_s2 + $0x70] sm:$0xff] %v213_v32 }

</bundles_post_ra>
